<compile_context>
chip_gen: v7x
topology: tpu7x:2x2x1
jax: 0.10.0
libtpu: 0.0.40
codegen_flags: <defaults>
</compile_context>

<pallas_src>
import math

import jax
import jax.numpy as jnp
from jax.experimental import pallas as pl
from jax.experimental.pallas import tpu as pltpu

EPS = 1e-8


def _adaptive_gate_kernel(x_ref, w1_ref, b1_ref, w2_ref, b2_ref, out_ref):
    x = x_ref[...]                                               # [TB, D]
    # Hidden layer: Linear -> ReLU (Dropout is identity at inference).
    h = jnp.dot(x, w1_ref[...], preferred_element_type=jnp.float32) + b1_ref[...]
    h = jnp.maximum(h, 0.0)                                      # [TB, H]
    # Output projection. W2/b2 already carry the 1/temperature factor, so this
    # IS the temperature-scaled logits.
    scaled = jnp.dot(h, w2_ref[...], preferred_element_type=jnp.float32) + b2_ref[...]
    # Numerically-stable softmax along the modality axis.
    m = jnp.max(scaled, axis=-1, keepdims=True)                  # [TB, 1]
    ex = jnp.exp(scaled - m)                                     # [TB, M]
    denom = jnp.sum(ex, axis=-1, keepdims=True)                  # [TB, 1]
    weights = ex / denom                                         # [TB, M]
    # Per-sample entropy from softmax intermediates (exact identity, no eps):
    #   log(weights) = scaled - m - log(denom)
    #   H = -sum(w * log w) = m + log(denom) - sum(w * scaled)   (since sum w = 1)
    ent = (m + jnp.log(denom)) - jnp.sum(weights * scaled, axis=-1, keepdims=True)
    # Single merged store: weights in lanes 0..M-1, entropy in lane M.
    out_ref[...] = jnp.concatenate([weights, ent], axis=-1).astype(out_ref.dtype)


def _round_up(x, m):
    return ((x + m - 1) // m) * m


def _select_tb(batch, block_batch, min_steps=4):
    """Batch-tile size: large enough to amortize grid-step overhead, but
    guaranteeing >= min_steps grid steps for large batches (v7x megacore)."""
    if batch <= 8:
        return batch
    tb = _round_up(-(-batch // min_steps), 8)     # 8-aligned ceil(B / min_steps)
    tb = min(tb, block_batch)
    tb = min(tb, _round_up(batch, 8))
    return max(tb, 8)


def adaptive_gate_forward(x, w1, b1, w2, b2, log_temperature, *,
                          min_temp=1.5, block_batch=4096, min_pallas_batch=1024):
    """x: [B, D]. Returns (weights [B, M] f32, entropy [B] f32)."""
    B, D = x.shape
    H = w1.shape[1]
    M = w2.shape[1]

    # Host-side glue: clamp + exp of the learnable temperature (inverse form).
    log_t = jnp.maximum(log_temperature, math.log(min_temp))
    inv_temp = jnp.exp(-log_t).astype(jnp.float32)

    if B < min_pallas_batch:
        # Small-batch fast path: a fused XLA graph beats a kernel launch here.
        h = jnp.maximum(jnp.dot(x, w1, preferred_element_type=jnp.float32) + b1, 0.0)
        scaled = (jnp.dot(h, w2, preferred_element_type=jnp.float32) + b2) * inv_temp
        m = jnp.max(scaled, axis=-1, keepdims=True)
        ex = jnp.exp(scaled - m)
        denom = jnp.sum(ex, axis=-1, keepdims=True)
        weights = ex / denom
        entropy = (m + jnp.log(denom)
                   - jnp.sum(weights * scaled, axis=-1, keepdims=True))[:, 0]
        return weights, entropy

    # Fold the inverse temperature into the output projection (exactly
    # equivalent to dividing the logits by the temperature afterwards).
    w2s = (w2 * inv_temp).astype(jnp.float32)
    b2s = (b2 * inv_temp).reshape(1, M).astype(jnp.float32)
    b1_2d = b1.reshape(1, H).astype(jnp.float32)

    tb = _select_tb(B, block_batch)
    grid = (pl.cdiv(B, tb),)

    cost = pl.CostEstimate(
        flops=2 * B * (D * H + H * M),
        transcendentals=B * (M + 1),
        bytes_accessed=(B * D * x.dtype.itemsize
                        + (D * H + H + H * M + M) * 4
                        + B * (M + 1) * 4),
    )

    fused = pl.pallas_call(
        _adaptive_gate_kernel,
        out_shape=jax.ShapeDtypeStruct((B, M + 1), jnp.float32),
        grid=grid,
        in_specs=[
            pl.BlockSpec((tb, D), lambda i: (i, 0)),   # x batch tile (dtype as given)
            pl.BlockSpec((D, H), lambda i: (0, 0)),    # W1 (VMEM-resident)
            pl.BlockSpec((1, H), lambda i: (0, 0)),    # b1 (VMEM-resident)
            pl.BlockSpec((H, M), lambda i: (0, 0)),    # W2 * 1/temp (VMEM-resident)
            pl.BlockSpec((1, M), lambda i: (0, 0)),    # b2 * 1/temp (VMEM-resident)
        ],
        out_specs=pl.BlockSpec((tb, M + 1), lambda i: (i, 0)),  # merged slab
        compiler_params=pltpu.CompilerParams(
            dimension_semantics=("parallel",),
        ),
        cost_estimate=cost,
    )(x, w1, b1_2d, w2s, b2s)

    return fused[:, :M], fused[:, M]


def init_params(key, input_dim, hidden_dim, num_modalities, init_temp=2.0):
    """Deterministic init mimicking PyTorch nn.Linear default (uniform +/- 1/sqrt(fan_in))."""
    k1, k2, k3, k4 = jax.random.split(key, 4)
    bound1 = 1.0 / math.sqrt(input_dim)
    bound2 = 1.0 / math.sqrt(hidden_dim)
    w1 = jax.random.uniform(k1, (input_dim, hidden_dim), jnp.float32, -bound1, bound1)
    b1 = jax.random.uniform(k2, (hidden_dim,), jnp.float32, -bound1, bound1)
    w2 = jax.random.uniform(k3, (hidden_dim, num_modalities), jnp.float32, -bound2, bound2)
    b2 = jax.random.uniform(k4, (num_modalities,), jnp.float32, -bound2, bound2)
    log_temperature = jnp.asarray(math.log(init_temp), jnp.float32)
    return w1, b1, w2, b2, log_temperature


def reference_forward(x, w1, b1, w2, b2, log_temperature, min_temp=1.5):
    """Pure-JAX reference matching the PyTorch module (eval mode)."""
    h = jnp.maximum(x @ w1 + b1, 0.0)
    logits = h @ w2 + b2
    temp = jnp.exp(jnp.maximum(log_temperature, math.log(min_temp)))
    weights = jax.nn.softmax(logits / temp, axis=-1)
    entropy = -jnp.sum(weights * jnp.log(weights + EPS), axis=-1)
    return weights, entropy


if __name__ == "__main__":
    # Small shapes consistent with the module: batch=8, input_dim=32,
    # hidden_dims=64, num_modalities=4.
    B, D, H, M = 8, 32, 64, 4

    key = jax.random.PRNGKey(0)
    kx, kp, kx2 = jax.random.split(key, 3)
    x = jax.random.normal(kx, (B, D), jnp.float32)
    w1, b1, w2, b2, log_temp = init_params(kp, D, H, M, init_temp=2.0)

    # Force the Pallas path (min_pallas_batch=0) so the kernel itself runs.
    weights, entropy = adaptive_gate_forward(x, w1, b1, w2, b2, log_temp,
                                             min_temp=1.5, min_pallas_batch=0)
    jax.block_until_ready((weights, entropy))

    ref_w, ref_e = reference_forward(x, w1, b1, w2, b2, log_temp, min_temp=1.5)
    assert jnp.allclose(weights, ref_w, atol=1e-5, rtol=1e-5)
    assert jnp.allclose(entropy, ref_e, atol=1e-5, rtol=1e-5)
    assert jnp.allclose(jnp.sum(weights, axis=-1), 1.0, atol=1e-5)

    # Multi-step batch grid with a ragged last tile (exercises pipelining with
    # VMEM-resident weights, the merged-output store, and boundary masking).
    B2 = 2500
    x2 = jax.random.normal(kx2, (B2, D), jnp.float32)
    w_big, e_big = adaptive_gate_forward(x2, w1, b1, w2, b2, log_temp,
                                         min_temp=1.5, block_batch=1024)
    jax.block_until_ready((w_big, e_big))
    ref_wb, ref_eb = reference_forward(x2, w1, b1, w2, b2, log_temp, min_temp=1.5)
    assert jnp.allclose(w_big, ref_wb, atol=1e-5, rtol=1e-5)
    assert jnp.allclose(e_big, ref_eb, atol=1e-5, rtol=1e-5)
    assert jnp.allclose(jnp.sum(w_big, axis=-1), 1.0, atol=1e-5)

    # Small-batch fast path (pure-XLA) also matches the reference.
    w_s, e_s = adaptive_gate_forward(x, w1, b1, w2, b2, log_temp, min_temp=1.5)
    jax.block_until_ready((w_s, e_s))
    assert jnp.allclose(w_s, ref_w, atol=1e-5, rtol=1e-5)
    assert jnp.allclose(e_s, ref_e, atol=1e-5, rtol=1e-5)

    print("KERNEL_OK")
</pallas_src>

<mosaic_0001>
module attributes {stable_mosaic.version = 11 : i64} {
  func.func @_adaptive_gate_kernel(%arg0: i32, %arg1: memref<8x32xf32, #tpu.memory_space<vmem>>, %arg2: memref<32x64xf32, #tpu.memory_space<vmem>>, %arg3: memref<1x64xf32, #tpu.memory_space<vmem>>, %arg4: memref<64x4xf32, #tpu.memory_space<vmem>>, %arg5: memref<1x4xf32, #tpu.memory_space<vmem>>, %arg6: memref<8x5xf32, #tpu.memory_space<vmem>>) attributes {dimension_semantics = [#tpu.dimension_semantics<parallel>], iteration_bounds = array<i64: 1>, scalar_prefetch = 0 : i64, scratch_operands = 0 : i64, tpu.core_type = #tpu.core_type<tc>, window_params = [{transform_indices = @transform_0, window_bounds = array<i64: 8, 32>}, {pipeline_mode = #tpu.pipeline_mode<synchronous>, transform_indices = @transform_1, window_bounds = array<i64: 32, 64>}, {pipeline_mode = #tpu.pipeline_mode<synchronous>, transform_indices = @transform_2, window_bounds = array<i64: 1, 64>}, {pipeline_mode = #tpu.pipeline_mode<synchronous>, transform_indices = @transform_3, window_bounds = array<i64: 64, 4>}, {pipeline_mode = #tpu.pipeline_mode<synchronous>, transform_indices = @transform_4, window_bounds = array<i64: 1, 4>}, {transform_indices = @transform_5, window_bounds = array<i64: 8, 5>}]} {
    %c0 = arith.constant 0 : index
    %c0_0 = arith.constant 0 : index
    %0 = vector.load %arg1[%c0, %c0_0] : memref<8x32xf32, #tpu.memory_space<vmem>>, vector<8x32xf32>
    %c0_1 = arith.constant 0 : index
    %c0_2 = arith.constant 0 : index
    %1 = vector.load %arg2[%c0_1, %c0_2] : memref<32x64xf32, #tpu.memory_space<vmem>>, vector<32x64xf32>
    %cst = arith.constant dense<0.000000e+00> : vector<8x64xf32>
    %2 = tpu.matmul %0, %1, %cst {dimension_numbers = #tpu.dot_dimension_numbers<[1], [0], [0], [1], [0, 0, 1, 1], [], []>} : vector<8x32xf32>, vector<32x64xf32>, vector<8x64xf32> -> vector<8x64xf32>
    %c0_3 = arith.constant 0 : index
    %c0_4 = arith.constant 0 : index
    %3 = vector.load %arg3[%c0_3, %c0_4] : memref<1x64xf32, #tpu.memory_space<vmem>>, vector<1x64xf32>
    %4 = vector.broadcast %3 : vector<1x64xf32> to vector<8x64xf32>
    %5 = arith.addf %2, %4 : vector<8x64xf32>
    %cst_5 = arith.constant 0.000000e+00 : f32
    %6 = vector.broadcast %cst_5 : f32 to vector<8x64xf32>
    %7 = arith.maximumf %5, %6 : vector<8x64xf32>
    %c0_6 = arith.constant 0 : index
    %c0_7 = arith.constant 0 : index
    %8 = vector.load %arg4[%c0_6, %c0_7] : memref<64x4xf32, #tpu.memory_space<vmem>>, vector<64x4xf32>
    %cst_8 = arith.constant dense<0.000000e+00> : vector<8x4xf32>
    %9 = tpu.matmul %7, %8, %cst_8 {dimension_numbers = #tpu.dot_dimension_numbers<[1], [0], [0], [1], [0, 0, 1, 1], [], []>} : vector<8x64xf32>, vector<64x4xf32>, vector<8x4xf32> -> vector<8x4xf32>
    %c0_9 = arith.constant 0 : index
    %c0_10 = arith.constant 0 : index
    %10 = vector.load %arg5[%c0_9, %c0_10] : memref<1x4xf32, #tpu.memory_space<vmem>>, vector<1x4xf32>
    %11 = vector.broadcast %10 : vector<1x4xf32> to vector<8x4xf32>
    %12 = arith.addf %9, %11 : vector<8x4xf32>
    %cst_11 = arith.constant dense<0xFF800000> : vector<8xf32>
    %13 = vector.multi_reduction <maximumf>, %12, %cst_11 [1] : vector<8x4xf32> to vector<8xf32>
    %14 = vector.shape_cast %13 : vector<8xf32> to vector<8x1xf32>
    %15 = vector.broadcast %14 : vector<8x1xf32> to vector<8x4xf32>
    %16 = arith.subf %12, %15 : vector<8x4xf32>
    %17 = math.exp %16 : vector<8x4xf32>
    %cst_12 = arith.constant dense<0.000000e+00> : vector<8xf32>
    %18 = vector.multi_reduction <add>, %17, %cst_12 [1] : vector<8x4xf32> to vector<8xf32>
    %19 = vector.shape_cast %18 : vector<8xf32> to vector<8x1xf32>
    %20 = vector.broadcast %19 : vector<8x1xf32> to vector<8x4xf32>
    %21 = arith.divf %17, %20 : vector<8x4xf32>
    %22 = math.log %19 : vector<8x1xf32>
    %23 = arith.addf %14, %22 : vector<8x1xf32>
    %24 = arith.mulf %21, %12 : vector<8x4xf32>
    %cst_13 = arith.constant dense<0.000000e+00> : vector<8xf32>
    %25 = vector.multi_reduction <add>, %24, %cst_13 [1] : vector<8x4xf32> to vector<8xf32>
    %26 = vector.shape_cast %25 : vector<8xf32> to vector<8x1xf32>
    %27 = arith.subf %23, %26 : vector<8x1xf32>
    %28 = tpu.concatenate %21, %27 in 1 : vector<8x4xf32>, vector<8x1xf32> -> vector<8x5xf32>
    %c0_14 = arith.constant 0 : index
    %c0_15 = arith.constant 0 : index
    %29 = vector.load %arg6[%c0_14, %c0_15] : memref<8x5xf32, #tpu.memory_space<vmem>>, vector<8x5xf32>
    tpu.vector_store %arg6[%c0_14, %c0_15], %28 {strides = array<i32>} : memref<8x5xf32, #tpu.memory_space<vmem>>, vector<8x5xf32>,
    return
  }
  func.func @transform_0(%arg0: i32) -> (i32, i32) {
    %c0_i32 = arith.constant 0 : i32
    %c0_i32_0 = arith.constant 0 : i32
    return %arg0, %c0_i32 : i32, i32
  }
  func.func @transform_1(%arg0: i32) -> (i32, i32) {
    %c0_i32 = arith.constant 0 : i32
    %c0_i32_0 = arith.constant 0 : i32
    %c0_i32_1 = arith.constant 0 : i32
    return %c0_i32, %c0_i32_0 : i32, i32
  }
  func.func @transform_2(%arg0: i32) -> (i32, i32) {
    %c0_i32 = arith.constant 0 : i32
    %c0_i32_0 = arith.constant 0 : i32
    %c0_i32_1 = arith.constant 0 : i32
    return %c0_i32, %c0_i32_0 : i32, i32
  }
  func.func @transform_3(%arg0: i32) -> (i32, i32) {
    %c0_i32 = arith.constant 0 : i32
    %c0_i32_0 = arith.constant 0 : i32
    %c0_i32_1 = arith.constant 0 : i32
    return %c0_i32, %c0_i32_0 : i32, i32
  }
  func.func @transform_4(%arg0: i32) -> (i32, i32) {
    %c0_i32 = arith.constant 0 : i32
    %c0_i32_0 = arith.constant 0 : i32
    %c0_i32_1 = arith.constant 0 : i32
    return %c0_i32, %c0_i32_0 : i32, i32
  }
  func.func @transform_5(%arg0: i32) -> (i32, i32) {
    %c0_i32 = arith.constant 0 : i32
    %c0_i32_0 = arith.constant 0 : i32
    return %arg0, %c0_i32 : i32, i32
  }
}

</mosaic_0001>

<bundles_post_ra>
// kernel: tpu_custom_call.1
= control target key start
LH: loop header
LB: loop body
LE: loop exit
PB: predicated region body
PF: predicated region fallthrough
CT: control target
= control target key end

     0   :  { %v334_v3 = vmov 0.0|0.0   ;;  %vm335_vm0 = vmmov 0   ;;  %v336_v6 = vmov 0.0   ;;  %s429_s0 = inlined_call_operand.vmem [shape: f32[8,32], index: 0, kind: input, shape index: {}]   ;;  %s430_s1 = inlined_call_operand.vmem [shape: f32[32,64], index: 1, kind: input, shape index: {}]   ;;  %s431_s2 = inlined_call_operand.vmem [shape: f32[1,64], index: 2, kind: input, shape index: {}]   ;;  %s432_s3 = inlined_call_operand.vmem [shape: f32[64,4], index: 3, kind: input, shape index: {}]   ;;  %s433_s4 = inlined_call_operand.vmem [shape: f32[1,4], index: 4, kind: input, shape index: {}]   ;;  %s434_s5 = inlined_call_operand.hbm [shape: f32[8,5], index: 5, kind: output, shape index: {}]  }
   0x1   :  { %v22_v0 = vld [vmem:[%s430_s1] sm:$0xff]  ;;  %v23_v1 = vld [vmem:[%s430_s1 + $0x8] sm:$0xff]  ;;  %v24_v2 = vld [vmem:[%s430_s1 + $0x10] sm:$0xff]  ;;  %282 = vmatprep.subr.bf16.mxu0 %v334_v3  ;;  %260 = vmatprep.mubr.msk.f32.mxu0 %vm335_vm0, %v336_v6 }
   0x2   :  { %v283_v4 = vpack.c.bf16 %v23_v1, %v22_v0  ;;  %v25_v5 = vld [vmem:[%s430_s1 + $0x18] sm:$0xff]  ;;  %v108_v7 = vld [vmem:[%s432_s3] sm:$0xff]  ;;  %288 = vmatprep.subr.bf16.mxu1 %v334_v3  ;;  %v109_v8 = vld [vmem:[%s432_s3 + $0x8] sm:$0xff]  ;;  %279 = vmatprep.mubr.msk.f32.mxu1 %vm335_vm0, %v336_v6 }
   0x3   :  { %v110_v9 = vld [vmem:[%s432_s3 + $0x10] sm:$0xff]  ;;  %v111_v10 = vld [vmem:[%s432_s3 + $0x18] sm:$0xff]  ;;  %v286_v11 = vpack.c.bf16 %v25_v5, %v24_v2  ;;  %v289_v12 = vpack.c.bf16 %v109_v8, %v108_v7 }
   0x4   :  { %284 = vmatpush3.bf16.msra.mxu0 %v283_v4 }
   0x5   :  { %285 = vmatprep.subr.bf16.mxu0 %v334_v3 }
   0x6   :  { %10 = vsyncpa [#allocation3], 0  ;;  %290 = vmatpush3.bf16.msra.mxu1 %v289_v12  ;;  %v292_v13 = vpack.c.bf16 %v111_v10, %v110_v9  ;;  %v112_v14 = vld [vmem:[%s432_s3 + $0x20] sm:$0xff]  ;;  %v113_v15 = vld [vmem:[%s432_s3 + $0x28] sm:$0xff]  ;;  %vm33_vm1 = vcmask 261120   ;;  %vm123_vm2 = vcmask 523264  }
   0x7   :  { %291 = vmatprep.subr.bf16.mxu1 %v334_v3  ;;  %v21_v16 = vld [vmem:[%s429_s0] sm:$0xff]  ;;  %v295_v17 = vpack.c.bf16 %v113_v15, %v112_v14  ;;  %v114_v18 = vld [vmem:[%s432_s3 + $0x30] sm:$0xff]  ;;  %v115_v19 = vld [vmem:[%s432_s3 + $0x38] sm:$0xff]  ;;  %vm197_vm3 = vcmask 31744   ;;  %vm218_vm4 = vcmask 39936  }
   0x8   :  { %287 = vmatpush3.bf16.msra.mxu0 %v286_v11  ;;  %v298_v20 = vpack.c.bf16 %v115_v19, %v114_v18  ;;  %v234_v21 = vld [vmem:[%s431_s2] ss:$0 sm:$0xff]  ;;  %s337_s2 = smov [#allocation2]  }
   0x9   :  { %v236_v26 = vld [vmem:[%s433_s4] ss:$0 sm:$0xff]  ;;  %s226_s3 = sshll.u32 %s337_s2, 4  ;;  %s227_s3 = int_to_ptr.vmem [resolvable:$true] %s226_s3 }
   0xa   :  { %293 = vmatpush3.bf16.msra.mxu1 %v292_v13  ;;  %s310_s4 = scalar_lea.vmem %s227_s3, 128  ;;  %p315_p1 = scmp.lt.s32.totalorder %s227_s3, %s227_s3 }
   0xb   :  { %261 = vmatmul.mubr.msk.f32.vlgmr.msra.gmra.mrb[0].mxu0 %vm33_vm1, %v21_v16  ;;  %294 = vmatprep.subr.bf16.mxu1 %v334_v3  ;;  %p311_p0 = scmp.ne.s32.totalorder %s227_s3, %s310_s4  ;;  %p316_p2 = scmp.lt.s32.totalorder %s310_s4, %s310_s4 }
   0xd   :  { %p317_p3 = por %p316_p2, %p315_p1 }
   0xe   :  { %296 = vmatpush3.bf16.msra.mxu1 %v295_v17 }
   0xf   :  { %297 = vmatprep.subr.bf16.mxu1 %v334_v3  ;;  %p318_p4 = pnand %p317_p3, %p311_p0 }
  0x12   :  { %299 = vmatpush3.bf16.msra.mxu1 %v298_v20 }
  0xde   :  { %v103_v22 = vpop.f32.mrb[0].mxu0 }
  0xdf   :  { %v104_v23 = vadd.f32 %v234_v21, %v103_v22  ;;  %v262_v24 = vpop.f32.mrb[1].mxu0 }
  0xe1   :  { %v107_v25 = vmax.f32 %v104_v23, 0.0 }
  0xe3   :  { %280 = vmatmul.mubr.msk.f32.vlgmr.msra.gmra.mrb[0].mxu1 %vm123_vm2, %v107_v25 }
 0x1b6   :  { %v193_v27 = vpop.f32.mrb[0].mxu1 }
 0x1b7   :  { %v194_v28 = vadd.f32 %v236_v26, %v193_v27  ;;  %v281_v29 = vpop.f32.mrb[1].mxu1 }
 0x1b9   :  { %v198_v30 = vsel %vm197_vm3, %v194_v28, -inf }
 0x1ba   :  { %199 = vmax.xlane.f32.xlu0 %v198_v30 }
 0x247   :  { %v200_v31 = vpop.xlane.xlu0 %199 }
 0x248   :  { %v201_v32 = vsub.f32 %v194_v28, %v200_v31 }
 0x24a   :  { %v202_v33 = vmul.f32 1.442695, %v201_v32 }
 0x24c   :  { %304 = vpow2.f32 %v202_v33 }
 0x256   :  { %v305_v34 = vpop.eup %304 }
 0x257   :  { %v204_v35 = vsel %vm197_vm3, %v305_v34, 0.0 }
 0x258   :  { %205 = vadd.xlane.f32.xlu0 %v204_v35 }
 0x2e5   :  { %v206_v36 = vpop.xlane.xlu0 %205 }
 0x2e6   :  { %306 = vrcp.f32 %v206_v36 }
 0x2e7   :  { %308 = vlog2.f32 %v206_v36 }
 0x2f0   :  { %v307_v37 = vpop.eup %306 }
 0x2f1   :  { %v208_v38 = vmul.f32 %v307_v37, %v305_v34  ;;  %v309_v41 = vpop.eup %308 }
 0x2f2   :  { %v210_v42 = vmul.f32 0.6931472, %v309_v41 }
 0x2f3   :  { %v212_v39 = vmul.f32 %v208_v38, %v194_v28 }
 0x2f4   :  { %v211_v43 = vadd.f32 %v210_v42, %v200_v31 }
 0x2f5   :  { %v213_v40 = vsel %vm197_vm3, %v212_v39, 0.0 }
 0x2f6   :  { %214 = vadd.xlane.f32.xlu1 %v213_v40 }
 0x383   :  { %v215_v44 = vpop.xlane.xlu1 %214 }
 0x384   :  { %v216_v45 = vsub.f32 %v211_v43, %v215_v44 }
 0x386   :  { %v217_v46 = vsel %vm197_vm3, %v208_v38, %v216_v45 }
 0x387   :  { %219 = vst.msk [vmem:[#allocation2] sm:$0xff] %vm218_vm4, %v217_v46 }
 0x388   :  { %321 = shalt.err (!%p318_p4)
}
 0x389   :  { %s322_s23 = scalar_lea.hbm %s434_s5, 128 }
 0x38a   :  { %p323_p5 = scmp.ne.s32.totalorder %s434_s5, %s322_s23  ;;  %p326_p6 = scmp.lt.u32.totalorder %s322_s23, %s434_s5 }
 0x38c   :  { %p328_p7 = pnand %p326_p6, %p323_p5 }
 0x38e   :  { %331 = shalt.err (!%p328_p7)
}
 0x38f   :  { %229 = dma.vmem_to_hbm [thread:$0]  %s227_s3, 128, %s434_s5, [#allocation3]  }
 0x390   :  { %332 = dma.done.wait [#allocation3], 128  }
 0x391   :  { %333 = vsyncadd [#allocation3], 4294967168 }
 0x392   :  { %233 = vsyncpa [#allocation3], 1 }

</bundles_post_ra>
